<compile_context>
chip_gen: v5e
topology: v5e:2x2
jax: 0.10.0
libtpu: 0.0.40
codegen_flags: <defaults>
</compile_context>

<pallas_src>
import math

import jax
import jax.numpy as jnp
from jax.experimental import pallas as pl
from jax.experimental.pallas import tpu as pltpu

PI2 = 2.0 * math.pi                       # matches torch pi2 tensor
WEEK_MINUTES_RADS = 7.0 * 1440.0 * PI2    # matches week_minutes_rads tensor


def temporal_embedding_kernel(wm_ref, o_ref):
    # wm_ref: (1, T) f32, week_minutes = dow*1440 + hour*60 + minute (integer-valued)
    # o_ref : (2, T) f32, row 0 = week_emb, row 1 = minute_emb
    wm = wm_ref[...]                                            # (1, T)

    # Recover minute_of_day = week_minutes mod 1440 (exact: values <= 11519 << 2^24).
    minute_of_day = wm - jnp.floor(wm * (1.0 / 1440.0)) * 1440.0

    # week embedding: sin(num / (7*1440*2*pi))  -- exact PyTorch semantics.
    week_emb = jnp.sin(wm / WEEK_MINUTES_RADS)                  # (1, T)

    # minute embedding: sin(((hour*60 + minute)/1440) * 2*pi).
    minute_emb = jnp.sin((minute_of_day / 1440.0) * PI2)        # (1, T)

    # One unmasked full-tile store (2, T) instead of two partial stores.
    o_ref[...] = jnp.concatenate([week_emb, minute_emb], axis=0)


def _round_up(x, m):
    return (x + m - 1) // m * m


def temporal_embedding(x, *, tile_n=2048):
    """x: (N, 3) float32 columns [day_of_week(1..7), hour, minute] -> (N, 2) f32.

    Output columns: [week_emb, minute_emb].
    """
    n = x.shape[0]
    x = x.astype(jnp.float32)
    dow, hour, minute = x[:, 0], x[:, 1], x[:, 2]

    # Hoist the trivial integer packing to the wrapper: 4 B/row into the kernel.
    week_minutes = dow * 1440.0 + hour * 60.0 + minute          # (N,), exact ints in f32

    # Lane tile: multiple of 128, at most tile_n; pad N up to a multiple of it.
    tile = min(tile_n, _round_up(max(n, 1), 128))
    n_pad = _round_up(n, tile)
    wm = jnp.zeros((1, n_pad), jnp.float32).at[0, :n].set(week_minutes)

    out = pl.pallas_call(
        temporal_embedding_kernel,
        out_shape=jax.ShapeDtypeStruct((2, n_pad), jnp.float32),
        grid=(n_pad // tile,),
        in_specs=[pl.BlockSpec((1, tile), lambda i: (0, i))],
        out_specs=pl.BlockSpec((2, tile), lambda i: (0, i)),
        compiler_params=pltpu.CompilerParams(
            dimension_semantics=("parallel",)),
    )(wm)

    # Back to the module's (N, 2) row layout.
    return out[:, :n].T


def temporal_embedding_ref(x):
    dow = x[:, 0:1]
    hour = x[:, 1:2]
    minute = x[:, 2:3]
    week_emb = jnp.sin((dow * 1440.0 + hour * 60.0 + minute) / WEEK_MINUTES_RADS)
    minute_emb = jnp.sin(((hour * 60.0 + minute) / 1440.0) * PI2)
    return jnp.concatenate([week_emb, minute_emb], axis=-1)


if __name__ == "__main__":
    # TODO(synk): datetime -> (dow, hour, minute) parsing and the TensorDict
    # caching / __getitem__ lookup from the PyTorch module are host-side glue
    # with no Pallas equivalent; only the numeric forward pass is kernelized.
    key = jax.random.PRNGKey(0)
    k1, k2, k3 = jax.random.split(key, 3)
    n = 8  # number of dates (tiny demo; the tiled kernel scales to large N)

    # Synthetic "parsed dates": day_of_week in [1,7], hour in [0,23], minute in [0,59].
    dow = jax.random.randint(k1, (n, 1), 1, 8)
    hour = jax.random.randint(k2, (n, 1), 0, 24)
    minute = jax.random.randint(k3, (n, 1), 0, 60)
    x = jnp.concatenate([dow, hour, minute], axis=-1).astype(jnp.float32)

    out = temporal_embedding(x)
    out = jax.block_until_ready(out)

    ref = temporal_embedding_ref(x)
    assert out.shape == (n, 2) and out.dtype == jnp.float32
    assert jnp.allclose(out, ref, atol=1e-6, rtol=1e-6)

    print("KERNEL_OK")
</pallas_src>

<mosaic_0001>
module attributes {stable_mosaic.version = 11 : i64} {
  func.func @temporal_embedding_kernel(%arg0: i32, %arg1: memref<1x128xf32, #tpu.memory_space<vmem>>, %arg2: memref<2x128xf32, #tpu.memory_space<vmem>>) attributes {dimension_semantics = [#tpu.dimension_semantics<parallel>], iteration_bounds = array<i64: 1>, scalar_prefetch = 0 : i64, scratch_operands = 0 : i64, tpu.core_type = #tpu.core_type<tc>, window_params = [{transform_indices = @transform_0, window_bounds = array<i64: 1, 128>}, {transform_indices = @transform_1, window_bounds = array<i64: 2, 128>}]} {
    %c0 = arith.constant 0 : index
    %c0_0 = arith.constant 0 : index
    %0 = vector.load %arg1[%c0, %c0_0] : memref<1x128xf32, #tpu.memory_space<vmem>>, vector<1x128xf32>
    %cst = arith.constant 6.94444461E-4 : f32
    %1 = vector.broadcast %cst : f32 to vector<1x128xf32>
    %2 = arith.mulf %0, %1 : vector<1x128xf32>
    %3 = math.floor %2 : vector<1x128xf32>
    %cst_1 = arith.constant 1.440000e+03 : f32
    %4 = vector.broadcast %cst_1 : f32 to vector<1x128xf32>
    %5 = arith.mulf %3, %4 : vector<1x128xf32>
    %6 = arith.subf %0, %5 : vector<1x128xf32>
    %cst_2 = arith.constant 63334.5078 : f32
    %7 = vector.broadcast %cst_2 : f32 to vector<1x128xf32>
    %8 = arith.divf %0, %7 : vector<1x128xf32>
    %9 = math.sin %8 : vector<1x128xf32>
    %cst_3 = arith.constant 1.440000e+03 : f32
    %10 = vector.broadcast %cst_3 : f32 to vector<1x128xf32>
    %11 = arith.divf %6, %10 : vector<1x128xf32>
    %cst_4 = arith.constant 6.28318548 : f32
    %12 = vector.broadcast %cst_4 : f32 to vector<1x128xf32>
    %13 = arith.mulf %11, %12 : vector<1x128xf32>
    %14 = math.sin %13 : vector<1x128xf32>
    %15 = tpu.concatenate %9, %14 in 0 : vector<1x128xf32>, vector<1x128xf32> -> vector<2x128xf32>
    %c0_5 = arith.constant 0 : index
    %c0_6 = arith.constant 0 : index
    %16 = vector.load %arg2[%c0_5, %c0_6] : memref<2x128xf32, #tpu.memory_space<vmem>>, vector<2x128xf32>
    tpu.vector_store %arg2[%c0_5, %c0_6], %15 {strides = array<i32>} : memref<2x128xf32, #tpu.memory_space<vmem>>, vector<2x128xf32>,
    return
  }
  func.func @transform_0(%arg0: i32) -> (i32, i32) {
    %c0_i32 = arith.constant 0 : i32
    %c0_i32_0 = arith.constant 0 : i32
    return %c0_i32, %arg0 : i32, i32
  }
  func.func @transform_1(%arg0: i32) -> (i32, i32) {
    %c0_i32 = arith.constant 0 : i32
    %c0_i32_0 = arith.constant 0 : i32
    return %c0_i32, %arg0 : i32, i32
  }
}

</mosaic_0001>

<bundles_post_ra>
// kernel: tpu_custom_call.1
= control target key start
LH: loop header
LB: loop body
LE: loop exit
PB: predicated region body
PF: predicated region fallthrough
CT: control target
= control target key end

     0   :  { %6 = vsyncpa [#allocation3], 0  ;;  %s629_s0 = inlined_call_operand.hbm [shape: f32[1,128], index: 0, kind: input, shape index: {}]   ;;  %s630_s1 = inlined_call_operand.hbm [shape: f32[2,128], index: 1, kind: output, shape index: {}]  }
   0x1   :  { %7 = vsyncpa [#allocation4], 0  ;;  %s13_s8 = sshll.u32 %s629_s0, 4  ;;  %s451_s9 = smov [#allocation2]   ;;  %s14_s8 = int_to_ptr.hbm [resolvable:$true] %s13_s8 }
   0x2   :  { %s15_s10 = sshll.u32 %s451_s9, 4  ;;  %s16_s10 = int_to_ptr.vmem [resolvable:$true] %s15_s10 }
   0x3   :  { %18 = dma.hbm_to_vmem [thread:$0]  %s14_s8, 16, %s16_s10, [#allocation3]  }
   0x4   :  { %447 = dma.done.wait [#allocation3], 16  }
   0x5   :  { %448 = vsyncadd [#allocation3], 4294967280  ;;  %v452_v0 = vmov 63334.508   ;;  %v453_v1 = vmov 1440.0   ;;  %s461_s0 = smov [#allocation5]  }
   0x6   :  { %395 = vrcp.f32 %v452_v0  ;;  %v23_v3 = vld [vmem:[#allocation2] sm:$0x1]  ;;  %v454_v40 = vmov 683565275   ;;  %v455_v42 = vmov 2475754826  }
   0x7   :  { %397 = vrcp.f32 %v453_v1  ;;  %v24_v4 = vmul.f32 0.00069444446, %v23_v3  ;;  %v456_v44 = vmov 2131351028   ;;  %v457_v46 = vmov 2102212464  }
   0x8   :  { %v458_v48 = vmov 920167782   ;;  %v459_v57 = vmov 1326507024   ;;  %s366_s11 = sshll.u32 %s461_s0, 4  ;;  %s368_s14 = sshll.u32 %s630_s1, 4  ;;  %s367_s11 = int_to_ptr.vmem [resolvable:$true] %s366_s11  ;;  %s369_s14 = int_to_ptr.hbm [resolvable:$true] %s368_s14 }
   0x9   :  { %v25_v7 = vfloor.f32 %v24_v4 }
   0xb   :  { %v26_v10 = vmul.f32 1440.0, %v25_v7 }
   0xc   :  { %v396_v2 = vpop.eup %395 }
   0xd   :  { %v29_v5 = vmul.f32 63334.508, %v396_v2  ;;  %v398_v6 = vpop.eup %397  ;;  %vm33_vm0 = vweird.f32 %v396_v2  ;;  %v27_v15 = vsub.f32 %v23_v3, %v26_v10 }
   0xe   :  { %v192_v9 = vmul.f32 1440.0, %v398_v6  ;;  %vm196_vm1 = vweird.f32 %v398_v6 }
   0xf   :  { %v30_v8 = vsub.f32 1.0, %v29_v5 }
  0x10   :  { %v193_v12 = vsub.f32 1.0, %v192_v9 }
  0x11   :  { %v31_v11 = vmul.f32 %v396_v2, %v30_v8 }
  0x12   :  { %v194_v14 = vmul.f32 %v398_v6, %v193_v12 }
  0x13   :  { %v32_v13 = vadd.f32 %v396_v2, %v31_v11 }
  0x14   :  { %v195_v17 = vadd.f32 %v398_v6, %v194_v14 }
  0x15   :  { %v34_v16 = vsel %vm33_vm0, %v396_v2, %v32_v13 }
  0x16   :  { %v475_v18 = vmul.f32 %v34_v16, %v23_v3  ;;  %v197_v19 = vsel %vm196_vm1, %v398_v6, %v195_v17 }
  0x17   :  { %v198_v22 = vmul.f32 %v197_v19, %v27_v15 }
  0x18   :  { %v36_v20 = vand.u32 2147483647, %v475_v18  ;;  %v39_v21 = vand.u32 2139095040, %v475_v18 }
  0x19   :  { %v481_v25 = vmul.f32 6.2831855, %v198_v22 }
  0x1a   :  { %v40_v23 = vshrl.u32 %v39_v21, 23  ;;  %v43_v24 = vand.u32 8388607, %v36_v20 }
  0x1b   :  { %v203_v28 = vand.u32 2139095040, %v481_v25  ;;  %v200_v30 = vand.u32 2147483647, %v481_v25 }
  0x1c   :  { %v378_v26 = vadd.s32 4294967169, %v40_v23  ;;  %v44_v27 = vor.u32 8388608, %v43_v24 }
  0x1d   :  { %v204_v31 = vshrl.u32 %v203_v28, 23  ;;  %v207_v37 = vand.u32 8388607, %v200_v30 }
  0x1e   :  { %v46_v29 = vadd.s32 1, %v378_v26  ;;  %v485_v33 = vshll.u32 %v44_v27, 8 }
  0x1f   :  { %v381_v34 = vadd.s32 4294967169, %v204_v31  ;;  %v208_v7 = vor.u32 8388608, %v207_v37 }
  0x20   :  { %vm47_vm2 = vcmp.gt.s32.totalorder %v46_v29, 0  ;;  %v85_v50 = vand.u32 65535, %v485_v33  ;;  %v86_v51 = vshrl.u32 %v485_v33, 16 }
  0x21   :  { %v48_v32 = vsel %vm47_vm2, %v46_v29, 0  ;;  %v210_v38 = vadd.s32 1, %v381_v34  ;;  %v515_v24 = vshll.u32 %v208_v7, 8 }
  0x22   :  { %v49_v35 = vshrl.u32 %v48_v32, 5  ;;  %v50_v36 = vand.u32 31, %v48_v32 }
  0x23   :  { %vm211_vm5 = vcmp.gt.s32.totalorder %v210_v38, 0 }
  0x24   :  { %v51_v39 = vsub.s32 32, %v50_v36  ;;  %v53_v41 = vshll.u32 %v454_v40, %v50_v36  ;;  %v56_v43 = vshll.u32 %v455_v42, %v50_v36  ;;  %v59_v45 = vshll.u32 %v456_v44, %v50_v36 }
  0x25   :  { %v62_v47 = vshll.u32 %v457_v46, %v50_v36  ;;  %v65_v49 = vshll.u32 %v458_v48, %v50_v36  ;;  %vm68_vm3 = vcmp.lt.s32.totalorder %v49_v35, 1  ;;  %vm71_vm4 = vcmp.lt.s32.totalorder %v49_v35, 4 }
  0x26   :  { %v54_v52 = vshrl.u32 %v455_v42, %v51_v39  ;;  %v57_v53 = vshrl.u32 %v456_v44, %v51_v39  ;;  %v60_v54 = vshrl.u32 %v457_v46, %v51_v39  ;;  %v52_v55 = vshrl.u32 %v454_v40, %v51_v39 }
  0x27   :  { %v63_v56 = vshrl.u32 %v458_v48, %v51_v39  ;;  %v66_v58 = vshrl.u32 %v459_v57, %v51_v39  ;;  %vm70_vm6 = vcmp.lt.s32.totalorder %v49_v35, 3  ;;  %v212_v0 = vsel %vm211_vm5, %v210_v38, 0 }
  0x28   :  { %v55_v59 = vor.u32 %v54_v52, %v53_v41  ;;  %v58_v60 = vor.u32 %v57_v53, %v56_v43  ;;  %v61_v61 = vor.u32 %v60_v54, %v59_v45  ;;  %vm69_vm7 = vcmp.lt.s32.totalorder %v49_v35, 2 }
  0x29   :  { %v64_v62 = vor.u32 %v63_v56, %v62_v47  ;;  %v67_v63 = vor.u32 %v66_v58, %v65_v49  ;;  %v214_v11 = vand.u32 31, %v212_v0  ;;  %v507_v14 = vshrl.u32 %v212_v0, 5 }
  0x2a   :  { %v73_v1 = vsel %vm71_vm4, %v61_v61, 2102212464  ;;  %v76_v2 = vsel %vm68_vm3, %v55_v59, %v58_v60  ;;  %v80_v3 = vsel %vm68_vm3, %v58_v60, %v61_v61  ;;  %v72_v4 = vsel %vm68_vm3, %v52_v55, %v55_v59 }
  0x2b   :  { %v77_v5 = vsel %vm71_vm4, %v64_v62, 920167782  ;;  %v81_v6 = vsel %vm71_vm4, %v67_v63, 1326507024  ;;  %v74_v8 = vsel %vm70_vm6, %v58_v60, %v73_v1  ;;  %v512_v22 = vsub.s32 32, %v214_v11 }
  0x2c   :  { %v78_v9 = vsel %vm70_vm6, %v61_v61, %v77_v5  ;;  %v82_v10 = vsel %vm70_vm6, %v64_v62, %v81_v6  ;;  %v510_v21 = vsel %vm69_vm7, %v72_v4, %v74_v8  ;;  %v217_v23 = vshll.u32 %v454_v40, %v214_v11 }
  0x2d   :  { %v79_v12 = vsel %vm69_vm7, %v76_v2, %v78_v9  ;;  %v83_v13 = vsel %vm69_vm7, %v80_v3, %v82_v10  ;;  %v220_v29 = vshll.u32 %v455_v42, %v214_v11  ;;  %v223_v36 = vshll.u32 %v456_v44, %v214_v11 }
  0x2e   :  { %v87_v15 = vand.u32 65535, %v83_v13  ;;  %v88_v16 = vshrl.u32 %v83_v13, 16  ;;  %v109_v17 = vand.u32 65535, %v79_v12  ;;  %v110_v19 = vshrl.u32 %v79_v12, 16 }
  0x2f   :  { %vm232_vm8 = vcmp.lt.s32.totalorder %v507_v14, 1  ;;  %v218_v53 = vshrl.u32 %v455_v42, %v512_v22  ;;  %v224_v1 = vshrl.u32 %v457_v46, %v512_v22  ;;  %v226_v2 = vshll.u32 %v457_v46, %v214_v11 }
  0x30   :  { %v89_v26 = vmul.u32 %v87_v15, %v85_v50  ;;  %v90_v27 = vmul.u32 %v88_v16, %v85_v50  ;;  %v91_v28 = vmul.u32 %v87_v15, %v86_v51  ;;  %v111_v31 = vmul.u32 %v109_v17, %v85_v50 }
  0x31   :  { %v112_v32 = vmul.u32 %v110_v19, %v85_v50  ;;  %v113_v34 = vmul.u32 %v109_v17, %v86_v51  ;;  %v92_v37 = vmul.u32 %v88_v16, %v86_v51  ;;  %v114_v39 = vmul.u32 %v110_v19, %v86_v51 }
  0x32   :  { %v93_v35 = vshll.u32 %v90_v27, 16  ;;  %v95_v38 = vshll.u32 %v91_v28, 16  ;;  %v94_v41 = vshrl.u32 %v90_v27, 16  ;;  %v96_v43 = vshrl.u32 %v91_v28, 16 }
  0x33   :  { %v115_v45 = vshll.u32 %v112_v32, 16  ;;  %v117_v47 = vshll.u32 %v113_v34, 16  ;;  %v116_v52 = vshrl.u32 %v112_v32, 16  ;;  %v460_v50 = vmov 0  }
  0x34   :  { %vm97_vm9 = vc.u32 %v89_v26, %v93_v35  ;;  %v99_v49 = vadd.s32 %v93_v35, %v89_v26  ;;  %v221_v51 = vshrl.u32 %v456_v44, %v512_v22  ;;  %v118_v58 = vshrl.u32 %v113_v34, 16 }
  0x35   :  { %v98_v54 = vsel %vm97_vm9, 1, %v460_v50  ;;  %vm119_vm10 = vc.u32 %v111_v31, %v115_v45  ;;  %v121_v55 = vadd.s32 %v115_v45, %v111_v31  ;;  %v527_v62 = vor.u32 %v218_v53, %v217_v23 }
  0x36   :  { %v100_v56 = vadd.s32 %v98_v54, %v92_v37  ;;  %vm101_vm11 = vc.u32 %v99_v49, %v95_v38  ;;  %v120_v59 = vsel %vm119_vm10, 1, %v460_v50  ;;  %v530_v0 = vor.u32 %v221_v51, %v220_v29 }
  0x37   :  { %v102_v60 = vsel %vm101_vm11, 1, %v460_v50  ;;  %v122_v61 = vadd.s32 %v120_v59, %v114_v39  ;;  %vm123_vm12 = vc.u32 %v121_v55, %v117_v47  ;;  %v227_v3 = vshrl.u32 %v458_v48, %v512_v22 }
  0x38   :  { %v104_v42 = vadd.s32 %v102_v60, %v100_v56  ;;  %v124_v63 = vsel %vm123_vm12, 1, %v460_v50  ;;  %v229_v4 = vshll.u32 %v458_v48, %v214_v11  ;;  %v538_v6 = vadd.s32 %v121_v55, %v117_v47 }
  0x39   :  { %v126_v44 = vadd.s32 %v124_v63, %v122_v61  ;;  %v225_v7 = vor.u32 %v224_v1, %v223_v36  ;;  %v230_v8 = vshrl.u32 %v459_v57, %v512_v22  ;;  %v228_v10 = vor.u32 %v227_v3, %v226_v2 }
  0x3a   :  { %v105_v5 = vadd.s32 %v104_v42, %v94_v41  ;;  %vm234_vm13 = vcmp.lt.s32.totalorder %v507_v14, 3  ;;  %vm235_vm14 = vcmp.lt.s32.totalorder %v507_v14, 4  ;;  %vm233_vm15 = vcmp.lt.s32.totalorder %v507_v14, 2 }
  0x3b   :  { %v127_v9 = vadd.s32 %v126_v44, %v116_v52  ;;  %v231_v46 = vor.u32 %v230_v8, %v229_v4  ;;  %v240_v48 = vsel %vm232_vm8, %v527_v62, %v530_v0  ;;  %v241_v57 = vsel %vm235_vm14, %v228_v10, 920167782 }
  0x3c   :  { %v544_v12 = vadd.s32 %v105_v5, %v96_v43  ;;  %v129_v11 = vmul.u32 %v485_v33, %v510_v21  ;;  %v242_v15 = vsel %vm234_vm13, %v225_v7, %v241_v57  ;;  %v249_v16 = vand.u32 65535, %v515_v24 }
  0x3d   :  { %v128_v13 = vadd.s32 %v127_v9, %v118_v58  ;;  %v243_v19 = vsel %vm233_vm15, %v240_v48, %v242_v15  ;;  %v244_v23 = vsel %vm232_vm8, %v530_v0, %v225_v7  ;;  %v245_v26 = vsel %vm235_vm14, %v231_v46, 1326507024 }
  0x3e   :  { %vm131_vm0 = vc.u32 %v544_v12, %v538_v6  ;;  %v246_v33 = vsel %vm234_vm13, %v228_v10, %v245_v26  ;;  %v250_v21 = vshrl.u32 %v515_v24, 16  ;;  %v273_v27 = vand.u32 65535, %v243_v19 }
  0x3f   :  { %v132_v17 = vadd.s32 1, %v128_v13  ;;  %v274_v28 = vshrl.u32 %v243_v19, 16  ;;  %v247_v31 = vsel %vm233_vm15, %v244_v23, %v246_v33  ;;  %v216_v54 = vshrl.u32 %v454_v40, %v512_v22 }
  0x40   :  { %v251_v34 = vand.u32 65535, %v247_v31  ;;  %v252_v36 = vshrl.u32 %v247_v31, 16  ;;  %v277_v35 = vmul.u32 %v273_v27, %v250_v21  ;;  %v275_v45 = vmul.u32 %v273_v27, %v249_v16 }
  0x41   :  { %v133_v29 = vsel %vm131_vm0, %v132_v17, %v128_v13  ;;  %v276_v37 = vmul.u32 %v274_v28, %v249_v16  ;;  %v237_v55 = vsel %vm235_vm14, %v225_v7, 2102212464  ;;  %v278_v60 = vmul.u32 %v274_v28, %v250_v21 }
  0x42   :  { %v134_v32 = vadd.s32 %v133_v29, %v129_v11  ;;  %v253_v39 = vmul.u32 %v251_v34, %v249_v16  ;;  %v254_v41 = vmul.u32 %v252_v36, %v249_v16  ;;  %v255_v43 = vmul.u32 %v251_v34, %v250_v21 }
  0x43   :  { %v279_v47 = vshll.u32 %v276_v37, 16  ;;  %v256_v52 = vmul.u32 %v252_v36, %v250_v21  ;;  %v281_v56 = vshll.u32 %v277_v35, 16  ;;  %v280_v42 = vshrl.u32 %v276_v37, 16 }
  0x44   :  { %v135_v38 = vadd.s32 536870912, %v134_v32  ;;  %v257_v53 = vshll.u32 %v254_v41, 16  ;;  %v259_v51 = vshll.u32 %v255_v43, 16  ;;  %v258_v44 = vshrl.u32 %v254_v41, 16 }
  0x45   :  { %vm283_vm2 = vc.u32 %v275_v45, %v279_v47  ;;  %v285_v63 = vadd.s32 %v279_v47, %v275_v45  ;;  %v260_v40 = vshrl.u32 %v255_v43, 16  ;;  %v236_v8 = vsel %vm232_vm8, %v216_v54, %v527_v62 }
  0x46   :  { %v572_v49 = vshrl.u32 %v135_v38, 30  ;;  %vm261_vm1 = vc.u32 %v253_v39, %v257_v53  ;;  %v263_v59 = vadd.s32 %v257_v53, %v253_v39  ;;  %v284_v3 = vsel %vm283_vm2, 1, %v460_v50 }
  0x47   :  { %v262_v61 = vsel %vm261_vm1, 1, %v460_v50  ;;  %vm287_vm4 = vc.u32 %v285_v63, %v281_v56  ;;  %v286_v7 = vadd.s32 %v284_v3, %v278_v60  ;;  %v238_v9 = vsel %vm234_vm13, %v530_v0, %v237_v55 }
  0x48   :  { %v137_v58 = vshll.u32 %v572_v49, 30  ;;  %v264_v2 = vadd.s32 %v262_v61, %v256_v52  ;;  %vm265_vm3 = vc.u32 %v263_v59, %v259_v51  ;;  %v288_v10 = vsel %vm287_vm4, 1, %v460_v50 }
  0x49   :  { %v266_v22 = vsel %vm265_vm3, 1, %v460_v50  ;;  %v282_v48 = vshrl.u32 %v277_v35, 16  ;;  %v290_v57 = vadd.s32 %v288_v10, %v286_v7  ;;  %v289_v15 = vadd.s32 %v285_v63, %v281_v56 }
  0x4a   :  { %v138_v1 = vsub.s32 %v134_v32, %v137_v58  ;;  %v268_v5 = vadd.s32 %v266_v22, %v264_v2  ;;  %v239_v23 = vsel %vm233_vm15, %v236_v8, %v238_v9  ;;  %v130_v62 = vadd.s32 %v538_v6, %v544_v12 }
  0x4b   :  { %v291_v17 = vadd.s32 %v290_v57, %v280_v42  ;;  %v293_v50 = vmul.u32 %v515_v24, %v239_v23  ;;  %vm38_vm8 = vcmp.lt.s32.totalorder %v475_v18, 0  ;;  %vm597_vm9 = vcmp.le.f32.partialorder %v36_v20, 0.7853982 }
  0x4c   :  { %vm139_vm5 = vcmp.lt.s32.totalorder %v138_v1, 0  ;;  %v140_v4 = vsub.s32 0, %v138_v1  ;;  %v269_v13 = vadd.s32 %v268_v5, %v258_v44  ;;  %v160_v9 = vsub.s32 4, %v572_v49 }
  0x4d   :  { %v292_v26 = vadd.s32 %v291_v17, %v282_v48  ;;  %vm202_vm12 = vcmp.lt.s32.totalorder %v481_v25, 0  ;;  %vm610_vm13 = vcmp.le.f32.partialorder %v200_v30, 0.7853982  ;;  %vm179_vm4 = vweird.f32 %v475_v18 }
  0x4e   :  { %v141_v46 = vsel %vm139_vm5, %v140_v4, %v138_v1  ;;  %v270_v16 = vadd.s32 %v269_v13, %v260_v40  ;;  %vm343_vm5 = vweird.f32 %v481_v25 }
  0x4f   :  { %v142_v11 = vclz %v141_v46  ;;  %v296_v33 = vadd.s32 1, %v292_v26 }
  0x50   :  { %vm295_vm7 = vc.u32 %v270_v16, %v289_v15  ;;  %v294_v58 = vadd.s32 %v289_v15, %v270_v16  ;;  %v161_v15 = vsel %vm38_vm8, %v160_v9, %v572_v49 }
  0x51   :  { %v379_v19 = vadd.s32 4294967294, %v142_v11  ;;  %v297_v29 = vsel %vm295_vm7, %v296_v33, %v292_v26 }
  0x52   :  { %v298_v34 = vadd.s32 %v297_v29, %v293_v50 }
  0x53   :  { %vm380_vm6 = vcmp.lt.s32.totalorder %v379_v19, 0 }
  0x54   :  { %v145_v0 = vsel %vm380_vm6, 0, %v379_v19  ;;  %v299_v37 = vadd.s32 536870912, %v298_v34  ;;  %vm358_vm6 = vcmask 1040384  }
  0x55   :  { %v146_v21 = vsub.s32 32, %v145_v0  ;;  %v147_v27 = vshll.u32 %v138_v1, %v145_v0  ;;  %v150_v28 = vsub.s32 4294967266, %v145_v0 }
  0x56   :  { %v300_v39 = vshrl.u32 %v299_v37, 30 }
  0x57   :  { %v148_v31 = vshrl.u32 %v130_v62, %v146_v21  ;;  %v151_v32 = vadd.s32 127, %v150_v28  ;;  %v163_v62 = vsel %vm597_vm9, 0, %v161_v15 }
  0x58   :  { %v301_v12 = vshll.u32 %v300_v39, 30  ;;  %v324_v48 = vsub.s32 4, %v300_v39  ;;  %v180_v49 = vadd.s32 3, %v163_v62 }
  0x59   :  { %v149_v36 = vor.u32 %v148_v31, %v147_v27  ;;  %v152_v14 = vshll.u32 %v151_v32, 23 }
  0x5a   :  { %v302_v24 = vsub.s32 %v298_v34, %v301_v12  ;;  %v325_v23 = vsel %vm202_vm12, %v324_v48, %v300_v39  ;;  %v181_v37 = vand.u32 3, %v180_v49 }
  0x5b   :  { %v153_v35 = vor.u32 4788187, %v152_v14  ;;  %v156_v38 = vcvt.s32.f32 %v149_v36  ;;  %v327_v0 = vsel %vm610_vm13, 0, %v325_v23 }
  0x5c   :  { %vm303_vm10 = vcmp.lt.s32.totalorder %v302_v24, 0  ;;  %v304_v47 = vsub.s32 0, %v302_v24  ;;  %v344_v31 = vadd.s32 3, %v327_v0  ;;  %vm183_vm14 = vcmp.eq.s32.totalorder %v181_v37, 0 }
  0x5d   :  { %v154_v6 = vand.u32 2147483647, %v153_v35  ;;  %vm186_vm15 = vcmp.eq.s32.totalorder %v181_v37, 2  ;;  %vm182_vm0 = vcmp.lt.s32.totalorder %v181_v37, 2 }
  0x5e   :  { %v305_v54 = vsel %vm303_vm10, %v304_v47, %v302_v24  ;;  %v345_v39 = vand.u32 3, %v344_v31 }
  0x5f   :  { %v157_v41 = vmul.f32 %v156_v38, %v154_v6  ;;  %v306_v55 = vclz %v305_v54 }
  0x60   :  { %vm350_vm1 = vcmp.eq.s32.totalorder %v345_v39, 2  ;;  %vm347_vm2 = vcmp.eq.s32.totalorder %v345_v39, 0  ;;  %vm346_vm3 = vcmp.lt.s32.totalorder %v345_v39, 2 }
  0x61   :  { %v158_v45 = vxor.u32 2147483648, %v157_v41  ;;  %v382_v56 = vadd.s32 4294967294, %v306_v55 }
  0x63   :  { %v159_v52 = vsel %vm38_vm8, %v158_v45, %v157_v41  ;;  %vm383_vm11 = vcmp.lt.s32.totalorder %v382_v56, 0 }
  0x64   :  { %v162_v53 = vsel %vm597_vm9, %v475_v18, %v159_v52  ;;  %v309_v59 = vsel %vm383_vm11, 0, %v382_v56 }
  0x65   :  { %v164_v51 = vmul.f32 %v162_v53, %v162_v53  ;;  %v310_v60 = vsub.s32 32, %v309_v59  ;;  %v311_v61 = vshll.u32 %v302_v24, %v309_v59  ;;  %v314_v42 = vsub.s32 4294967266, %v309_v59 }
  0x67   :  { %v172_v20 = vmul.f32 -0.00019511016, %v164_v51  ;;  %v312_v63 = vshrl.u32 %v294_v58, %v310_v60  ;;  %v165_v1 = vmul.f32 -0.001358992, %v164_v51  ;;  %v315_v2 = vadd.s32 127, %v314_v42 }
  0x69   :  { %v173_v44 = vadd.f32 0.008332121, %v172_v20  ;;  %v313_v40 = vor.u32 %v312_v63, %v311_v61  ;;  %v316_v22 = vshll.u32 %v315_v2, 23  ;;  %v166_v3 = vadd.f32 0.041655596, %v165_v1 }
  0x6b   :  { %v174_v4 = vmul.f32 %v173_v44, %v164_v51  ;;  %v317_v5 = vor.u32 4788187, %v316_v22  ;;  %v320_v7 = vcvt.s32.f32 %v313_v40  ;;  %v167_v10 = vmul.f32 %v166_v3, %v164_v51 }
  0x6d   :  { %v318_v8 = vand.u32 2147483647, %v317_v5  ;;  %v175_v46 = vadd.f32 -0.16666654, %v174_v4  ;;  %v168_v16 = vadd.f32 -0.4999988, %v167_v10 }
  0x6f   :  { %v321_v13 = vmul.f32 %v320_v7, %v318_v8  ;;  %v176_v17 = vmul.f32 %v175_v46, %v164_v51  ;;  %v169_v50 = vmul.f32 %v168_v16, %v164_v51 }
  0x71   :  { %v322_v11 = vxor.u32 2147483648, %v321_v13  ;;  %v177_v33 = vadd.f32 1.0, %v176_v17  ;;  %v170_v32 = vadd.f32 1.0, %v169_v50 }
  0x73   :  { %v323_v19 = vsel %vm202_vm12, %v322_v11, %v321_v13  ;;  %v178_v34 = vmul.f32 %v177_v33, %v162_v53  ;;  %v187_v12 = vxor.u32 2147483648, %v170_v32 }
  0x74   :  { %v326_v26 = vsel %vm610_vm13, %v481_v25, %v323_v19 }
  0x75   :  { %v328_v30 = vmul.f32 %v326_v26, %v326_v26  ;;  %v184_v6 = vxor.u32 2147483648, %v178_v34  ;;  %v188_v52 = vsel %vm186_vm15, %v187_v12, %v178_v34 }
  0x77   :  { %v329_v21 = vmul.f32 -0.001358992, %v328_v30  ;;  %v336_v27 = vmul.f32 -0.00019511016, %v328_v30  ;;  %v185_v47 = vsel %vm183_vm14, %v170_v32, %v184_v6 }
  0x78   :  { %v189_v56 = vsel %vm182_vm0, %v185_v47, %v188_v52 }
  0x79   :  { %v330_v28 = vadd.f32 0.041655596, %v329_v21  ;;  %v337_v29 = vadd.f32 0.008332121, %v336_v27  ;;  %v190_v59 = vsel %vm179_vm4, nan, %v189_v56 }
  0x7b   :  { %v331_v36 = vmul.f32 %v330_v28, %v328_v30  ;;  %v338_v14 = vmul.f32 %v337_v29, %v328_v30 }
  0x7d   :  { %v332_v35 = vadd.f32 -0.4999988, %v331_v36  ;;  %v339_v38 = vadd.f32 -0.16666654, %v338_v14 }
  0x7f   :  { %v333_v41 = vmul.f32 %v332_v35, %v328_v30  ;;  %v340_v24 = vmul.f32 %v339_v38, %v328_v30 }
  0x81   :  { %v334_v43 = vadd.f32 1.0, %v333_v41  ;;  %v341_v45 = vadd.f32 1.0, %v340_v24 }
  0x83   :  { %v342_v54 = vmul.f32 %v341_v45, %v326_v26  ;;  %v351_v53 = vxor.u32 2147483648, %v334_v43 }
  0x85   :  { %v348_v55 = vxor.u32 2147483648, %v342_v54  ;;  %v352_v51 = vsel %vm350_vm1, %v351_v53, %v342_v54 }
  0x87   :  { %v349_v58 = vsel %vm347_vm2, %v334_v43, %v348_v55 }
  0x88   :  { %v353_v20 = vsel %vm346_vm3, %v349_v58, %v352_v51 }
  0x89   :  { %v354_v60 = vsel %vm343_vm5, nan, %v353_v20 }
  0x8a   :  { %v356_v61 = vperm.slane %v354_v60, 0 }
  0x8c   :  { %v359_v42 = vsel %vm358_vm6, %v190_v59, %v356_v61 }
  0x8d   :  { %360 = vst [vmem:[#allocation5] sm:$0x3] %v359_v42 }
  0x8e   :  { %371 = dma.vmem_to_hbm [thread:$0]  %s367_s11, 32, %s369_s14, [#allocation4]  }
  0x8f   :  { %449 = dma.done.wait [#allocation4], 32  }
  0x90   :  { %450 = vsyncadd [#allocation4], 4294967264 }
  0x91   :  { %376 = vsyncpa [#allocation3], 1 }
  0x92   :  { %377 = vsyncpa [#allocation4], 1 }

</bundles_post_ra>
